<compile_context>
chip_gen: v6e
topology: v6e:2x2x1
jax: 0.10.0
libtpu: 0.0.40
codegen_flags: <defaults>
</compile_context>

<pallas_src>
import jax
import jax.numpy as jnp
from jax.experimental import pallas as pl
from jax.experimental.pallas import tpu as pltpu


def _round_up(x, m):
    return (x + m - 1) // m * m


def _cdiv(a, b):
    return (a + b - 1) // b


def from_s2_kernel(x_ref, w_ref, o_ref):
    # x_ref: (tz, Kp)  flattened sphere-grid signal tile (K = res_beta*res_alpha)
    # w_ref: (Kp, ti)  fused (sha . shb) operator tile (VMEM-resident when ti==Ip)
    # o_ref: (tz, ti)  output spherical-tensor tile (lane-dense, 128-padded I)
    o_ref[...] = jnp.dot(
        x_ref[...], w_ref[...], preferred_element_type=jnp.float32
    ).astype(o_ref.dtype)


def make_from_s2_grid(sha, shb, *, tz=512, compute_dtype=None):
    """Build the FromS2Grid forward; the fused operator is precomputed once.

    sha: [2*lmax+1, res_alpha]
    shb: [2*lmax+1, res_beta, (lmax+1)^2]
    returns callable:  x[..., res_beta, res_alpha] -> [..., (lmax+1)^2]
    """
    M, A = sha.shape
    M2, B, I = shb.shape
    assert M == M2
    K = B * A

    # Fused operator: W[b*A + a, i] = sum_m sha[m, a] * shb[m, b, i].
    # Built and 128-padded ONCE (setup time), not on the per-call hot path.
    W = jnp.einsum('ma,mbi->bai', sha, shb).reshape(K, I)
    Kp = _round_up(K, 128)
    Ip = _round_up(I, 128)
    Wp = jnp.pad(W, ((0, Kp - K), (0, Ip - I)))

    cdt = jnp.dtype(compute_dtype) if compute_dtype is not None else jnp.dtype(W.dtype)
    Wp = jax.device_put(jnp.asarray(Wp, cdt))
    in_b = cdt.itemsize

    # Row quantum: (8,128) tiles for 32-bit, (16,128) for bf16 sublane packing.
    rq = 16 if cdt == jnp.dtype(jnp.bfloat16) else 8

    # I-tiling: keep the resident W tile well inside v7x's 64 MiB VMEM.
    w_tile_budget = 12 << 20
    ti = Ip
    if Kp * Ip * in_b > w_tile_budget:
        ti = max(128, (w_tile_budget // (Kp * in_b)) // 128 * 128)
    nj = _cdiv(Ip, ti)

    tz_req = _round_up(max(int(tz), rq), rq)

    def apply(x):
        size = x.shape[:-2]
        assert x.shape[-2:] == (B, A), (x.shape, (B, A))
        out_dt = x.dtype
        out_b = jnp.dtype(out_dt).itemsize

        xf = x.reshape(-1, K)
        Z = xf.shape[0]
        if compute_dtype is not None:
            xf = xf.astype(cdt)
        if Kp != K:
            # Zero-pad only the contraction axis (lane-dense loads; exact since
            # the matching W rows are zero).  The Z axis is never padded.
            xf = jnp.pad(xf, ((0, 0), (0, Kp - K)))

        # Batch tile: large enough to amortize per-grid-step overhead, but keep
        # >= 2 Z-steps so both v7x TensorCores get work when Z allows it.
        tzz = tz_req
        if Z > rq:
            tzz = min(tzz, _round_up(_cdiv(Z, 2), rq))
        tzz = max(tzz, rq)
        gz = _cdiv(Z, tzz)

        # W is single-buffered when fully resident (constant block index);
        # default double-buffering when streaming I tiles (large lmax).
        if nj == 1:
            w_spec = pl.BlockSpec((Kp, ti), lambda i, j: (0, j),
                                  pipeline_mode=pl.Buffered(1))
            w_bufs = 1
        else:
            w_spec = pl.BlockSpec((Kp, ti), lambda i, j: (0, j))
            w_bufs = 2

        # VMEM request sized from actual need + headroom; capped well under
        # v7x's 64 MiB physical per-TC VMEM (v5e/v6e have 128 MiB).
        need = (2 * tzz * Kp * in_b            # double-buffered x tiles
                + 2 * tzz * ti * out_b         # double-buffered out tiles
                + w_bufs * Kp * ti * in_b)     # W tile(s)
        vmem_limit = int(min(max(need + (4 << 20), 16 << 20), 48 << 20))

        out = pl.pallas_call(
            from_s2_kernel,
            out_shape=jax.ShapeDtypeStruct((Z, Ip), out_dt),
            grid_spec=pltpu.PrefetchScalarGridSpec(
                num_scalar_prefetch=0,
                grid=(gz, nj),
                in_specs=[
                    pl.BlockSpec((tzz, Kp), lambda i, j: (i, 0)),  # stream x
                    w_spec,                                        # W resident
                ],
                out_specs=pl.BlockSpec((tzz, ti), lambda i, j: (i, j)),
            ),
            compiler_params=pltpu.CompilerParams(
                dimension_semantics=("parallel", "parallel"),
                vmem_limit_bytes=vmem_limit,
            ),
        )(xf, Wp)

        if Ip != I:
            out = out[:, :I]   # crop only the lane-padded I axis (Z is exact)
        return out.reshape(*size, I)

    return jax.jit(apply)


def from_s2_grid(x, sha, shb, *, tz=512, compute_dtype=None):
    """One-shot convenience wrapper (prefer make_from_s2_grid to hoist setup)."""
    return make_from_s2_grid(sha, shb, tz=tz, compute_dtype=compute_dtype)(x)


if __name__ == "__main__":
    # Module configuration (mirrors FromS2Grid.__init__ with res=(16, 16)):
    res_beta, res_alpha = 16, 16          # res_beta must be even
    lmax = res_beta // 2 - 1              # 7
    M = 2 * lmax + 1                      # 15  (m dimension)
    I = (lmax + 1) ** 2                   # 64  (output i = l*m dimension)

    key = jax.random.PRNGKey(0)
    k_sha, k_shb, k_x = jax.random.split(key, 3)

    # Buffers with the shapes produced in __init__:
    #   sha = spherical_harmonics_alpha_part(lmax, alphas)        -> [M, res_alpha]
    #   shb = einsum('lmb,lmi,l,b->mbi', shb, m, n, qw)           -> [M, res_beta, I]
    # TODO(synk): exact e3nn o3 / S3 coefficient values (associated Legendre
    # recursion, expand matrix, quadrature weights) are not reproduced here;
    # deterministic synthetic buffers of the correct shapes are used instead.
    sha = jax.random.normal(k_sha, (M, res_alpha), dtype=jnp.float32)
    shb = jax.random.normal(k_shb, (M, res_beta, I), dtype=jnp.float32)

    # Input signal on the sphere grid, batch dims (2, 8): x [..., beta, alpha]
    x = jax.random.normal(k_x, (2, 8, res_beta, res_alpha), dtype=jnp.float32)

    from_s2 = make_from_s2_grid(sha, shb)       # setup (fused operator) once
    out = jax.block_until_ready(from_s2(x))     # hot path: one MXU matmul

    # Plain-JAX reference of the module's exact two-stage forward.
    xf = x.reshape(-1, res_beta, res_alpha)
    xm_ref = jnp.einsum('ma,zba->zbm', sha, xf)
    ref = jnp.einsum('mbi,zbm->zi', shb, xm_ref).reshape(2, 8, I)

    assert out.shape == (2, 8, I), out.shape
    assert out.dtype == x.dtype
    max_err = float(jnp.max(jnp.abs(out - ref)))
    assert jnp.allclose(out, ref, atol=1e-3, rtol=1e-4), max_err
    print("KERNEL_OK")
</pallas_src>

<mosaic_0001>
module attributes {stable_mosaic.version = 11 : i64} {
  func.func @from_s2_kernel(%arg0: i32, %arg1: i32, %arg2: memref<8x256xf32, #tpu.memory_space<vmem>>, %arg3: memref<256x128xf32, #tpu.memory_space<vmem>>, %arg4: memref<8x128xf32, #tpu.memory_space<vmem>>) attributes {dimension_semantics = [#tpu.dimension_semantics<parallel>, #tpu.dimension_semantics<parallel>], iteration_bounds = array<i64: 2, 1>, scalar_prefetch = 0 : i64, scratch_operands = 0 : i64, tpu.core_type = #tpu.core_type<tc>, window_params = [{transform_indices = @transform_0, window_bounds = array<i64: 8, 256>}, {pipeline_mode = #tpu.pipeline_mode<synchronous>, transform_indices = @transform_1, window_bounds = array<i64: 256, 128>}, {transform_indices = @transform_2, window_bounds = array<i64: 8, 128>}]} {
    %c0 = arith.constant 0 : index
    %c0_0 = arith.constant 0 : index
    %0 = vector.load %arg2[%c0, %c0_0] : memref<8x256xf32, #tpu.memory_space<vmem>>, vector<8x256xf32>
    %c0_1 = arith.constant 0 : index
    %c0_2 = arith.constant 0 : index
    %1 = vector.load %arg3[%c0_1, %c0_2] : memref<256x128xf32, #tpu.memory_space<vmem>>, vector<256x128xf32>
    %cst = arith.constant dense<0.000000e+00> : vector<8x128xf32>
    %2 = tpu.matmul %0, %1, %cst {dimension_numbers = #tpu.dot_dimension_numbers<[1], [0], [0], [1], [0, 0, 1, 1], [], []>} : vector<8x256xf32>, vector<256x128xf32>, vector<8x128xf32> -> vector<8x128xf32>
    %c0_3 = arith.constant 0 : index
    %c0_4 = arith.constant 0 : index
    %3 = vector.load %arg4[%c0_3, %c0_4] : memref<8x128xf32, #tpu.memory_space<vmem>>, vector<8x128xf32>
    tpu.vector_store %arg4[%c0_3, %c0_4], %2 {strides = array<i32>} : memref<8x128xf32, #tpu.memory_space<vmem>>, vector<8x128xf32>,
    return
  }
  func.func @transform_0(%arg0: i32, %arg1: i32) -> (i32, i32) {
    %c0_i32 = arith.constant 0 : i32
    %c0_i32_0 = arith.constant 0 : i32
    return %arg0, %c0_i32 : i32, i32
  }
  func.func @transform_1(%arg0: i32, %arg1: i32) -> (i32, i32) {
    %c0_i32 = arith.constant 0 : i32
    %c0_i32_0 = arith.constant 0 : i32
    return %c0_i32, %arg1 : i32, i32
  }
  func.func @transform_2(%arg0: i32, %arg1: i32) -> (i32, i32) {
    %c0_i32 = arith.constant 0 : i32
    return %arg0, %arg1 : i32, i32
  }
}

</mosaic_0001>

<bundles_post_ra>
// kernel: apply.1
= control target key start
LH: loop header
LB: loop body
LE: loop exit
PB: predicated region body
PF: predicated region fallthrough
CT: control target
= control target key end

     0   :  { %s481_s9 = smov 0   ;;  %s483_s10 = smov 0   ;;  %s618_s0 = inlined_call_operand.vmem [shape: f32[16,256], index: 0, kind: input, shape index: {}]   ;;  %s619_s1 = inlined_call_operand.vmem [shape: f32[256,128], index: 1, kind: input, shape index: {}]   ;;  %s620_s2 = inlined_call_operand.vmem [shape: f32[16,128], index: 2, kind: output, shape index: {}]  }
   0x1   :  { %s485_s11 = smov 0  }
   0x2 LB: > { %s24_s12 = sadd.s32 1, %s460_s10  ;;  %p376_p0 = scmp.ge.s32.totalorder %s464_s11, 1  ;;  %s464_s11 = sphi %s485_s11, %s12_s11   ;;  %s460_s10 = sphi %s483_s10, %s622_s10   ;;  %s456_s9 = sphi %s481_s9, %s621_s9  }
   0x3   : > { %p26_p1 = scmp.ge.s32.totalorder %s24_s12, 2  ;;  %p135_p2 = scmp.lt.s32.totalorder %s464_s11, 3 }
   0x5   : > { %s624_s12 = smov (%p26_p1, %s24_s12), 0  ;;  %p136_p3 = pnand %p376_p0, %p135_p2 }
   0x6   : > { %p163_p4 = scmp.lt.s32.totalorder (!%p136_p3), %s456_s9, 1 }
   0x7   : > { %139 = sbr.rel (%p136_p3) target bundleno = 243 (0xf3), region = 28 }
   0xc   : > { %v212_v0 = vld [vmem:[%s619_s1 + $0xf8] sm:$0xff]  ;;  %v211_v2 = vld [vmem:[%s619_s1 + $0xf0] sm:$0xff]  ;;  %v210_v4 = vld [vmem:[%s619_s1 + $0xe8] sm:$0xff]  ;;  %s626_s9 = smov (!%p163_p4, %s456_s9), 1 }
   0xd   : > { %v196_v1 = vld [vmem:[%s619_s1 + $0x78] sm:$0xff]  ;;  %383 = vmatprep.subr.mxu0 %v212_v0  ;;  %v195_v3 = vld [vmem:[%s619_s1 + $0x70] sm:$0xff]  ;;  %v194_v5 = vld [vmem:[%s619_s1 + $0x68] sm:$0xff]  ;;  %s382_s27 = sshll.u32 %s626_s9, 4  ;;  %s379_s6 = sshll.u32 %s626_s9, 3 }
   0xe   : > { %384 = vmatpush3.msra.mxu0 %v196_v1  ;;  %v209_v6 = vld [vmem:[%s619_s1 + $0xe0] sm:$0xff]  ;;  %v208_v8 = vld [vmem:[%s619_s1 + $0xd8] sm:$0xff]  ;;  %s535_s8 = scalar_lea.vmem %s618_s0, %s382_s27  ;;  %v207_v10 = vld [vmem:[%s619_s1 + $0xd0] sm:$0xff]  ;;  %s178_s14 = scalar_lea.vmem %s620_s2, %s379_s6 }
   0xf   : > { %385 = vmatprep.subr.mxu0 %v211_v2  ;;  %v193_v7 = vld [vmem:[%s619_s1 + $0x60] sm:$0xff]  ;;  %v192_v9 = vld [vmem:[%s619_s1 + $0x58] sm:$0xff]  ;;  %v191_v11 = vld [vmem:[%s619_s1 + $0x50] sm:$0xff] }
  0x10   : > { %386 = vmatpush3.msra.mxu0 %v195_v3  ;;  %v206_v12 = vld [vmem:[%s619_s1 + $0xc8] sm:$0xff]  ;;  %v205_v15 = vld [vmem:[%s619_s1 + $0xc0] sm:$0xff]  ;;  %v204_v17 = vld [vmem:[%s619_s1 + $0xb8] sm:$0xff] }
  0x11   : > { %387 = vmatprep.subr.mxu0 %v210_v4  ;;  %v180_v13 = vld [vmem:[%s535_s8 + $0x8] sm:$0xff]  ;;  %v189_v16 = vld [vmem:[%s619_s1 + $0x40] sm:$0xff]  ;;  %v188_v18 = vld [vmem:[%s619_s1 + $0x38] sm:$0xff] }
  0x12   : > { %388 = vmatpush3.msra.mxu0 %v194_v5  ;;  %v190_v14 = vld [vmem:[%s619_s1 + $0x48] sm:$0xff]  ;;  %277 = vmatprep.mubr.f32.mxu0 %v180_v13  ;;  %v203_v19 = vld [vmem:[%s619_s1 + $0xb0] sm:$0xff]  ;;  %v201_v23 = vld [vmem:[%s619_s1 + $0xa0] sm:$0xff] }
  0x13   : > { %389 = vmatprep.subr.mxu0 %v209_v6  ;;  %v187_v20 = vld [vmem:[%s619_s1 + $0x30] sm:$0xff]  ;;  %v202_v21 = vld [vmem:[%s619_s1 + $0xa8] sm:$0xff]  ;;  %v185_v24 = vld [vmem:[%s619_s1 + $0x20] sm:$0xff] }
  0x14   : > { %390 = vmatpush3.msra.mxu0 %v193_v7  ;;  %v186_v22 = vld [vmem:[%s619_s1 + $0x28] sm:$0xff]  ;;  %v200_v25 = vld [vmem:[%s619_s1 + $0x98] sm:$0xff]  ;;  %v199_v27 = vld [vmem:[%s619_s1 + $0x90] sm:$0xff] }
  0x15   : > { %391 = vmatprep.subr.mxu0 %v208_v8  ;;  %v184_v26 = vld [vmem:[%s619_s1 + $0x18] sm:$0xff]  ;;  %v183_v28 = vld [vmem:[%s619_s1 + $0x10] sm:$0xff]  ;;  %v198_v29 = vld [vmem:[%s619_s1 + $0x88] sm:$0xff] }
  0x16   : > { %392 = vmatpush3.msra.mxu0 %v192_v9  ;;  %v182_v30 = vld [vmem:[%s619_s1 + $0x8] sm:$0xff]  ;;  %v197_v31 = vld [vmem:[%s619_s1 + $0x80] sm:$0xff] }
  0x17   : > { %393 = vmatprep.subr.mxu0 %v207_v10  ;;  %v181_v32 = vld [vmem:[%s619_s1] sm:$0xff] }
  0x18   : > { %394 = vmatpush3.msra.mxu0 %v191_v11  ;;  %v179_v33 = vld [vmem:[%s535_s8] sm:$0xff] }
  0x19   : > { %395 = vmatprep.subr.mxu0 %v206_v12 }
  0x1a   : > { %396 = vmatpush3.msra.mxu0 %v190_v14 }
  0x1b   : > { %397 = vmatprep.subr.mxu0 %v205_v15 }
  0x1c   : > { %398 = vmatpush3.msra.mxu0 %v189_v16 }
  0x1d   : > { %399 = vmatprep.subr.mxu0 %v204_v17 }
  0x1e   : > { %400 = vmatpush3.msra.mxu0 %v188_v18 }
  0x1f   : > { %401 = vmatprep.subr.mxu0 %v203_v19 }
  0x20   : > { %402 = vmatpush3.msra.mxu0 %v187_v20 }
  0x21   : > { %403 = vmatprep.subr.mxu0 %v202_v21 }
  0x22   : > { %404 = vmatpush3.msra.mxu0 %v186_v22 }
  0x23   : > { %405 = vmatprep.subr.mxu0 %v201_v23 }
  0x24   : > { %406 = vmatpush3.msra.mxu0 %v185_v24 }
  0x25   : > { %407 = vmatprep.subr.mxu0 %v200_v25 }
  0x26   : > { %408 = vmatpush3.msra.mxu0 %v184_v26 }
  0x27   : > { %409 = vmatprep.subr.mxu0 %v199_v27 }
  0x28   : > { %410 = vmatpush3.msra.mxu0 %v183_v28 }
  0x29   : > { %411 = vmatprep.subr.mxu0 %v198_v29 }
  0x2a   : > { %412 = vmatpush3.msra.mxu0 %v182_v30 }
  0x2b   : > { %413 = vmatprep.subr.mxu0 %v197_v31 }
  0x2c   : > { %414 = vmatpush3.msra.mxu0 %v181_v32 }
  0x2d   : > { %278 = vmatmul.mubr.f32.vlgmr.msra.gmra.mxu0 %v179_v33 }
  0xed   : > { %v415_v34 = vpop.f32.mrf.mxu0 }
  0xef   : > { %v416_v35 = vpop.f32.mrf.mxu0 }
  0xf0   : > { %v417_v36 = vadd.f32 %v416_v35, %v415_v34 }
  0xf2   : > { %283 = vst [vmem:[%s178_s14] sm:$0xff] %v417_v36 }
  0xf3 PF: > { %s12_s11 = sadd.s32 1, %s464_s11   ;;  %s621_s9 = smov %s460_s10 }
  0xf4   : > { %p9_p5 = scmp.ge.s32.totalorder %s12_s11, 4   ;;  %s622_s10 = smov %s624_s12 }
  0xf6   :  { %11 = sbr.rel (!%p9_p5) target bundleno = 2 (0x2), region = 61 }

</bundles_post_ra>
